<compile_context>
chip_gen: v7x
topology: tpu7x:2x2x1
jax: 0.10.0
libtpu: 0.0.40
codegen_flags: <defaults>
</compile_context>

<pallas_src>
import jax
import jax.numpy as jnp
from jax import lax
from jax.experimental import pallas as pl
from jax.experimental.pallas import tpu as pltpu


def _gate_cnn_kernel(x_ref, w_ref, o_ref, xpad_ref):
    # x_ref   : (TB, L,  C)    raw activations, resident across all L-tiles
    # w_ref   : (K,  C, 2C)    fused bf16 weights, tap-major, [cnn | gate] on Cout
    # o_ref   : (TB, TL, C)    output tile
    # xpad_ref: (TB, L+2p, C)  f32 scratch: zero-padded ('same' halo) copy of x
    j = pl.program_id(1)
    TB, TL, C = o_ref.shape
    K = w_ref.shape[0]
    pad = (K - 1) // 2
    L = x_ref.shape[1]

    # Build the zero-padded sequence once per batch tile (j == 0); the conv
    # boundary handling then costs nothing per tap.
    @pl.when(j == 0)
    def _():
        xpad_ref[...] = jnp.zeros_like(xpad_ref)
        xpad_ref[:, pl.ds(pad, L), :] = x_ref[...].astype(xpad_ref.dtype)

    base = j * TL
    m = TB * TL
    acc = jnp.zeros((m, 2 * C), jnp.float32)
    # K is a static Python int -> loop unrolls; each tap is a bare MXU matmul
    # accumulated straight into `acc` (no elementwise ops between dot and add).
    for k in range(K):
        win = xpad_ref[:, pl.ds(base + k, TL), :]            # (TB, TL, C) f32
        lhs = win.reshape(m, C).astype(jnp.bfloat16)         # bf16 MXU feed
        acc = acc + jnp.dot(lhs, w_ref[k],
                            preferred_element_type=jnp.float32)

    conv = acc[:, :C]
    gate = acc[:, C:]
    y = conv * jax.nn.sigmoid(gate)                          # f32 epilogue (EUP)
    o_ref[...] = y.reshape(TB, TL, C).astype(o_ref.dtype)


def _largest_divisor_leq(n, cap, multiple_of=1):
    for d in range(min(n, cap), 0, -1):
        if n % d == 0 and d % multiple_of == 0:
            return d
    return None


def gate_cnn(x, w_cnn, w_gate, *, out_dtype=None, target_rows=512):
    """GateCNN forward: conv_cnn(x) * sigmoid(conv_gate(x)).

    x: (B, L, C) activations; w_cnn / w_gate: (Cout, Cin, K) PyTorch Conv1d layout.
    `out_dtype=jnp.bfloat16` halves output HBM traffic if downstream allows it.
    """
    B, L, C = x.shape
    Cout, Cin, K = w_cnn.shape
    assert (Cout, Cin) == (C, C) and w_gate.shape == (C, C, K)
    assert K % 2 == 1, "kernel_size must be odd for 'same' padding semantics"
    pad = (K - 1) // 2
    out_dtype = x.dtype if out_dtype is None else jnp.dtype(out_dtype)

    # Fused tap-major weights (K, Cin, 2*Cout): columns [:C] = cnn, [C:] = gate.
    w = jnp.concatenate(
        [jnp.transpose(w_cnn, (2, 1, 0)), jnp.transpose(w_gate, (2, 1, 0))],
        axis=-1).astype(jnp.bfloat16)

    # L tile (sublane-friendly divisor of L) and batch tile so the matmul M
    # dimension is ~target_rows (keeps the 256x256 MXU reasonably full).
    TL = L if L <= 512 else (_largest_divisor_leq(L, 512, multiple_of=8) or L)
    TB = _largest_divisor_leq(B, max(1, target_rows // TL)) or 1
    grid = (B // TB, L // TL)

    # Size-aware scoped-VMEM request (double-buffered x and out blocks, padded
    # scratch, fused weights), clamped for v7x's 64 MiB physical VMEM.
    need = (2 * TB * L * C * x.dtype.itemsize
            + 2 * TB * TL * C * out_dtype.itemsize
            + TB * (L + 2 * pad) * C * 4
            + 2 * w.size * 2)
    vmem_limit = int(min(max(2 * need, 32 * 2 ** 20), 64 * 2 ** 20))

    return pl.pallas_call(
        _gate_cnn_kernel,
        out_shape=jax.ShapeDtypeStruct((B, L, C), out_dtype),
        grid_spec=pltpu.PrefetchScalarGridSpec(
            num_scalar_prefetch=0,
            grid=grid,
            in_specs=[
                # Full sequence per batch tile; index map ignores j so the x
                # block is DMA'd once and stays resident across its L-tiles.
                pl.BlockSpec((TB, L, C), lambda i, j: (i, 0, 0)),
                pl.BlockSpec((K, C, 2 * C), lambda i, j: (0, 0, 0)),
            ],
            out_specs=pl.BlockSpec((TB, TL, C), lambda i, j: (i, j, 0)),
            scratch_shapes=[pltpu.VMEM((TB, L + 2 * pad, C), jnp.float32)],
        ),
        compiler_params=pltpu.CompilerParams(
            # i (batch tiles) is parallel for megacore; j carries the padded-x
            # scratch across L-tiles, so it must stay "arbitrary".
            dimension_semantics=("parallel", "arbitrary"),
            vmem_limit_bytes=vmem_limit,
        ),
    )(x, w)


def gate_cnn_reference(x, w_cnn, w_gate):
    """Reference via lax.conv (mirrors the PyTorch NCL convention), f32."""
    K = w_cnn.shape[2]
    pad = (K - 1) // 2
    x_ncl = jnp.transpose(x, (0, 2, 1))  # (B, C, L) == torch x.transpose(1, 2)

    def conv(wt):
        y = lax.conv_general_dilated(
            x_ncl, wt, window_strides=(1,), padding=[(pad, pad)],
            dimension_numbers=('NCH', 'OIH', 'NCH'))
        return jnp.transpose(y, (0, 2, 1))  # back to (B, L, C)

    return conv(w_cnn) * jax.nn.sigmoid(conv(w_gate))


if __name__ == "__main__":
    # Small config consistent with the module: hidden_size=32, kernel_size=3.
    B, L, H, K = 2, 8, 32, 3

    key = jax.random.PRNGKey(0)
    kx, kc, kg = jax.random.split(key, 3)
    x = jax.random.normal(kx, (B, L, H), dtype=jnp.float32)
    # Conv1d weights, PyTorch layout (out_channels, in_channels, kernel_size).
    w_cnn = jax.random.normal(kc, (H, H, K), dtype=jnp.float32) * 0.1
    w_gate = jax.random.normal(kg, (H, H, K), dtype=jnp.float32) * 0.1

    out = jax.block_until_ready(gate_cnn(x, w_cnn, w_gate))

    ref = gate_cnn_reference(x, w_cnn, w_gate)
    assert out.shape == (B, L, H)
    assert out.dtype == x.dtype
    # bf16 MXU inputs -> loosen tolerance vs the f32 lax.conv reference.
    assert jnp.allclose(out, ref, atol=2e-2, rtol=2e-2), "mismatch vs reference"

    print("KERNEL_OK")
</pallas_src>

<mosaic_0001>
module attributes {stable_mosaic.version = 11 : i64} {
  func.func @_gate_cnn_kernel(%arg0: i32, %arg1: i32, %arg2: memref<2x8x32xf32, #tpu.memory_space<vmem>>, %arg3: memref<3x32x64xbf16, #tpu.memory_space<vmem>>, %arg4: memref<2x8x32xf32, #tpu.memory_space<vmem>>, %arg5: memref<2x10x32xf32, #tpu.memory_space<vmem>>) attributes {dimension_semantics = [#tpu.dimension_semantics<parallel>, #tpu.dimension_semantics<arbitrary>], iteration_bounds = array<i64: 1, 1>, scalar_prefetch = 0 : i64, scratch_operands = 1 : i64, tpu.core_type = #tpu.core_type<tc>, window_params = [{transform_indices = @transform_0, window_bounds = array<i64: 2, 8, 32>}, {pipeline_mode = #tpu.pipeline_mode<synchronous>, transform_indices = @transform_1, window_bounds = array<i64: 3, 32, 64>}, {transform_indices = @transform_2, window_bounds = array<i64: 2, 8, 32>}]} {
    %c0_i32 = arith.constant 0 : i32
    %0 = arith.cmpi eq, %arg1, %c0_i32 : i32
    %1 = arith.extui %0 : i1 to i32
    %c0_i32_0 = arith.constant 0 : i32
    %2 = arith.cmpi ne, %1, %c0_i32_0 : i32
    scf.if %2 {
      %cst_21 = arith.constant 0.000000e+00 : f32
      %42 = vector.broadcast %cst_21 : f32 to vector<2x10x32xf32>
      %c0_22 = arith.constant 0 : index
      %c0_23 = arith.constant 0 : index
      %c0_24 = arith.constant 0 : index
      %43 = vector.load %arg5[%c0_22, %c0_23, %c0_24] : memref<2x10x32xf32, #tpu.memory_space<vmem>>, vector<2x10x32xf32>
      tpu.vector_store %arg5[%c0_22, %c0_23, %c0_24], %42 {strides = array<i32>} : memref<2x10x32xf32, #tpu.memory_space<vmem>>, vector<2x10x32xf32>,
      %c0_25 = arith.constant 0 : index
      %c0_26 = arith.constant 0 : index
      %c0_27 = arith.constant 0 : index
      %44 = vector.load %arg2[%c0_25, %c0_26, %c0_27] : memref<2x8x32xf32, #tpu.memory_space<vmem>>, vector<2x8x32xf32>
      %c0_28 = arith.constant 0 : index
      %c1_29 = arith.constant 1 : index
      %c0_30 = arith.constant 0 : index
      %45 = vector.load %arg5[%c0_28, %c1_29, %c0_30] : memref<2x10x32xf32, #tpu.memory_space<vmem>>, vector<2x8x32xf32>
      tpu.vector_store %arg5[%c0_28, %c1_29, %c0_30], %44 {strides = array<i32>} : memref<2x10x32xf32, #tpu.memory_space<vmem>>, vector<2x8x32xf32>,
    } else {
    }
    %c8_i32 = arith.constant 8 : i32
    %3 = arith.muli %arg1, %c8_i32 : i32
    %cst = arith.constant 0.000000e+00 : f32
    %4 = vector.broadcast %cst : f32 to vector<16x64xf32>
    %c0_i32_1 = arith.constant 0 : i32
    %5 = arith.addi %3, %c0_i32_1 : i32
    %c0 = arith.constant 0 : index
    %6 = arith.index_cast %5 : i32 to index
    %c0_2 = arith.constant 0 : index
    %7 = vector.load %arg5[%c0, %6, %c0_2] : memref<2x10x32xf32, #tpu.memory_space<vmem>>, vector<2x8x32xf32>
    %8 = vector.shape_cast %7 : vector<2x8x32xf32> to vector<16x32xf32>
    %9 = arith.truncf %8 : vector<16x32xf32> to vector<16x32xbf16>
    %c0_3 = arith.constant 0 : index
    %c0_4 = arith.constant 0 : index
    %c0_5 = arith.constant 0 : index
    %10 = vector.load %arg3[%c0_3, %c0_4, %c0_5] : memref<3x32x64xbf16, #tpu.memory_space<vmem>>, vector<1x32x64xbf16>
    %11 = vector.shape_cast %10 : vector<1x32x64xbf16> to vector<32x64xbf16>
    %cst_6 = arith.constant dense<0.000000e+00> : vector<16x64xf32>
    %12 = tpu.matmul %9, %11, %cst_6 {dimension_numbers = #tpu.dot_dimension_numbers<[1], [0], [0], [1], [0, 0, 1, 1], [], []>} : vector<16x32xbf16>, vector<32x64xbf16>, vector<16x64xf32> -> vector<16x64xf32>
    %13 = arith.addf %4, %12 : vector<16x64xf32>
    %c1_i32 = arith.constant 1 : i32
    %14 = arith.addi %3, %c1_i32 : i32
    %c0_7 = arith.constant 0 : index
    %15 = arith.index_cast %14 : i32 to index
    %c0_8 = arith.constant 0 : index
    %16 = vector.load %arg5[%c0_7, %15, %c0_8] : memref<2x10x32xf32, #tpu.memory_space<vmem>>, vector<2x8x32xf32>
    %17 = vector.shape_cast %16 : vector<2x8x32xf32> to vector<16x32xf32>
    %18 = arith.truncf %17 : vector<16x32xf32> to vector<16x32xbf16>
    %c1 = arith.constant 1 : index
    %c0_9 = arith.constant 0 : index
    %c0_10 = arith.constant 0 : index
    %19 = vector.load %arg3[%c1, %c0_9, %c0_10] : memref<3x32x64xbf16, #tpu.memory_space<vmem>>, vector<1x32x64xbf16>
    %20 = vector.shape_cast %19 : vector<1x32x64xbf16> to vector<32x64xbf16>
    %cst_11 = arith.constant dense<0.000000e+00> : vector<16x64xf32>
    %21 = tpu.matmul %18, %20, %cst_11 {dimension_numbers = #tpu.dot_dimension_numbers<[1], [0], [0], [1], [0, 0, 1, 1], [], []>} : vector<16x32xbf16>, vector<32x64xbf16>, vector<16x64xf32> -> vector<16x64xf32>
    %22 = arith.addf %13, %21 : vector<16x64xf32>
    %c2_i32 = arith.constant 2 : i32
    %23 = arith.addi %3, %c2_i32 : i32
    %c0_12 = arith.constant 0 : index
    %24 = arith.index_cast %23 : i32 to index
    %c0_13 = arith.constant 0 : index
    %25 = vector.load %arg5[%c0_12, %24, %c0_13] : memref<2x10x32xf32, #tpu.memory_space<vmem>>, vector<2x8x32xf32>
    %26 = vector.shape_cast %25 : vector<2x8x32xf32> to vector<16x32xf32>
    %27 = arith.truncf %26 : vector<16x32xf32> to vector<16x32xbf16>
    %c2 = arith.constant 2 : index
    %c0_14 = arith.constant 0 : index
    %c0_15 = arith.constant 0 : index
    %28 = vector.load %arg3[%c2, %c0_14, %c0_15] : memref<3x32x64xbf16, #tpu.memory_space<vmem>>, vector<1x32x64xbf16>
    %29 = vector.shape_cast %28 : vector<1x32x64xbf16> to vector<32x64xbf16>
    %cst_16 = arith.constant dense<0.000000e+00> : vector<16x64xf32>
    %30 = tpu.matmul %27, %29, %cst_16 {dimension_numbers = #tpu.dot_dimension_numbers<[1], [0], [0], [1], [0, 0, 1, 1], [], []>} : vector<16x32xbf16>, vector<32x64xbf16>, vector<16x64xf32> -> vector<16x64xf32>
    %31 = arith.addf %22, %30 : vector<16x64xf32>
    %32 = vector.extract_strided_slice %31 {offsets = [0, 0], sizes = [16, 32], strides = [1, 1]} : vector<16x64xf32> to vector<16x32xf32>
    %33 = vector.extract_strided_slice %31 {offsets = [0, 32], sizes = [16, 32], strides = [1, 1]} : vector<16x64xf32> to vector<16x32xf32>
    %34 = arith.negf %33 : vector<16x32xf32>
    %35 = math.exp %34 : vector<16x32xf32>
    %cst_17 = arith.constant 1.000000e+00 : f32
    %36 = vector.broadcast %cst_17 : f32 to vector<16x32xf32>
    %37 = arith.addf %36, %35 : vector<16x32xf32>
    %38 = arith.divf %36, %37 : vector<16x32xf32>
    %39 = arith.mulf %32, %38 : vector<16x32xf32>
    %40 = vector.shape_cast %39 : vector<16x32xf32> to vector<2x8x32xf32>
    %c0_18 = arith.constant 0 : index
    %c0_19 = arith.constant 0 : index
    %c0_20 = arith.constant 0 : index
    %41 = vector.load %arg4[%c0_18, %c0_19, %c0_20] : memref<2x8x32xf32, #tpu.memory_space<vmem>>, vector<2x8x32xf32>
    tpu.vector_store %arg4[%c0_18, %c0_19, %c0_20], %40 {strides = array<i32>} : memref<2x8x32xf32, #tpu.memory_space<vmem>>, vector<2x8x32xf32>,
    return
  }
  func.func @transform_0(%arg0: i32, %arg1: i32) -> (i32, i32, i32) {
    %c0_i32 = arith.constant 0 : i32
    %c0_i32_0 = arith.constant 0 : i32
    %c0_i32_1 = arith.constant 0 : i32
    return %arg0, %c0_i32, %c0_i32_0 : i32, i32, i32
  }
  func.func @transform_1(%arg0: i32, %arg1: i32) -> (i32, i32, i32) {
    %c0_i32 = arith.constant 0 : i32
    %c0_i32_0 = arith.constant 0 : i32
    %c0_i32_1 = arith.constant 0 : i32
    %c0_i32_2 = arith.constant 0 : i32
    return %c0_i32, %c0_i32_0, %c0_i32_1 : i32, i32, i32
  }
  func.func @transform_2(%arg0: i32, %arg1: i32) -> (i32, i32, i32) {
    %c0_i32 = arith.constant 0 : i32
    %c0_i32_0 = arith.constant 0 : i32
    return %arg0, %arg1, %c0_i32 : i32, i32, i32
  }
}

</mosaic_0001>

<bundles_post_ra>
// kernel: tpu_custom_call.1
= control target key start
LH: loop header
LB: loop body
LE: loop exit
PB: predicated region body
PF: predicated region fallthrough
CT: control target
= control target key end

     0   :  { %7 = vsyncpa [#allocation4], 0  ;;  %s524_s0 = inlined_call_operand.hbm [shape: f32[2,8,32], index: 0, kind: input, shape index: {}]   ;;  %s525_s1 = inlined_call_operand.hbm [shape: bf16[3,32,64], index: 1, kind: input, shape index: {}]   ;;  %s526_s2 = inlined_call_operand.hbm [shape: f32[2,8,32], index: 2, kind: output, shape index: {}]  }
   0x1   :  { %8 = vsyncpa [#allocation7], 0 }
   0x2   :  { %9 = vsyncpa [#allocation5], 0  ;;  %s445_s9 = smov [#allocation3]   ;;  %s373_s13 = scalar_lea.hbm %s524_s0, 256 }
   0x3   :  { %s15_s10 = sshll.u32 %s445_s9, 4  ;;  %p374_p0 = scmp.ne.s32.totalorder %s524_s0, %s373_s13  ;;  %s16_s10 = int_to_ptr.vmem [resolvable:$true] %s15_s10 }
   0x4   :  { %p377_p1 = scmp.lt.u32.totalorder %s373_s13, %s524_s0 }
   0x6   :  { %p379_p2 = pnand %p377_p1, %p374_p0 }
   0x8   :  { %382 = shalt.err (!%p379_p2)
}
   0x9   :  { %s383_s18 = scalar_lea.vmem %s16_s10, 256  ;;  %p388_p4 = scmp.lt.s32.totalorder %s16_s10, %s16_s10 }
   0xa   :  { %p384_p3 = scmp.ne.s32.totalorder %s16_s10, %s383_s18  ;;  %p389_p5 = scmp.lt.s32.totalorder %s383_s18, %s383_s18 }
   0xc   :  { %p390_p6 = por %p389_p5, %p388_p4 }
   0xe   :  { %p391_p7 = pnand %p390_p6, %p384_p3 }
  0x10   :  { %394 = shalt.err (!%p391_p7)
}
  0x11   :  { %s446_s19 = smov 128   ;;  %s447_s20 = smov 8  }
  0x12   :  { %21 = dma.hbm_to_vmem [thread:$0]  %s524_s0, 256, %s16_s10, [#allocation4], %s446_s19, %s446_s19, %s447_s20  }
  0x13   :  { %s448_s23 = smov [#allocation6]   ;;  %s395_s27 = scalar_lea.hbm %s525_s1, 768 }
  0x14   :  { %s27_s24 = sshll.u32 %s448_s23, 4  ;;  %p396_p8 = scmp.ne.s32.totalorder %s525_s1, %s395_s27  ;;  %s28_s24 = int_to_ptr.vmem [resolvable:$true] %s27_s24 }
  0x15   :  { %p399_p9 = scmp.lt.u32.totalorder %s395_s27, %s525_s1 }
  0x17   :  { %p401_p10 = pnand %p399_p9, %p396_p8 }
  0x19   :  { %404 = shalt.err (!%p401_p10)
}
  0x1a   :  { %s405_s4 = scalar_lea.vmem %s28_s24, 768  ;;  %p410_p12 = scmp.lt.s32.totalorder %s28_s24, %s28_s24 }
  0x1b   :  { %p406_p11 = scmp.ne.s32.totalorder %s28_s24, %s405_s4  ;;  %p411_p13 = scmp.lt.s32.totalorder %s405_s4, %s405_s4 }
  0x1d   :  { %p412_p0 = por %p411_p13, %p410_p12 }
  0x1f   :  { %p413_p1 = pnand %p412_p0, %p406_p11 }
  0x21   :  { %416 = shalt.err (!%p413_p1)
}
  0x22   :  { %s449_s0 = smov 64   ;;  %s450_s5 = smov 4  }
  0x23   :  { %33 = dma.hbm_to_vmem [thread:$0]  %s525_s1, 768, %s28_s24, [#allocation7], %s449_s0, %s449_s0, %s450_s5  }
  0x24   :  { %439 = dma.done.wait [#allocation4], 256  }
  0x25   :  { %440 = vsyncadd [#allocation4], 4294967040 }
  0x26   :  { %441 = dma.done.wait [#allocation7], 768  }
  0x27   :  { %442 = vsyncadd [#allocation7], 4294966528  ;;  %vm45_vm0 = vcmask 261120   ;;  %vm47_vm1 = vcmask 254976   ;;  %v451_v0 = vmov 0.0   ;;  %vm452_vm2 = vmmov 0  }
  0x28   :  { %327 = vmatprep.subr.bf16.mxu0 %v451_v0  ;;  %331 = vmatprep.mubr.msk.bf16.mxu0 %vm452_vm2, %v451_v0  ;;  %46 = vst.msk [vmem:[#allocation2] sm:$0xff] %vm45_vm0, %v451_v0  ;;  %49 = vst.msk [vmem:[#allocation2 + $0x10] sm:$0xff] %vm45_vm0, %v451_v0  ;;  %v359_v1 = vld [vmem:[#allocation6] sm:$0xff]   ;;  %v360_v2 = vld [vmem:[#allocation6 + $0x8] sm:$0xff]   ;;  %s453_s1 = smov 96   ;;  %s454_s8 = smov [#allocation8]  }
  0x29   :  { %48 = vst.msk [vmem:[#allocation2 + $0x8] sm:$0x3] %vm47_vm1, %v451_v0  ;;  %50 = vst.msk [vmem:[#allocation2 + $0x18] sm:$0x3] %vm47_vm1, %v451_v0  ;;  %319 = vmatprep.subr.bf16.mxu1 %v451_v0  ;;  %323 = vmatprep.mubr.msk.bf16.mxu1 %vm452_vm2, %v451_v0  ;;  %v51_v3 = vld [vmem:[#allocation3] sm:$0xff]  ;;  %v52_v4 = vld [vmem:[#allocation3 + $0x8] sm:$0xff] }
  0x2a   :  { %328 = vmatpush3.bf16.msra.mxu0 %v359_v1  ;;  %53 = vst.msk [vmem:[#allocation2 + $0x1] sm:$0xff] %vm45_vm0, %v51_v3  ;;  %54 = vst.msk [vmem:[#allocation2 + $0x11] sm:$0xff] %vm45_vm0, %v52_v4  ;;  %v362_v5 = vld [vmem:[#allocation6 + $0x10] sm:$0xff]   ;;  %v363_v6 = vld [vmem:[#allocation6 + $0x18] sm:$0xff]   ;;  %s284_s9 = sshll.u32 %s454_s8, 4  ;;  %s285_s9 = int_to_ptr.vmem [resolvable:$true] %s284_s9 }
  0x2b   :  { %329 = vmatprep.subr.bf16.mxu0 %v451_v0  ;;  %320 = vmatpush3.bf16.msra.mxu1 %v362_v5  ;;  %v361_v7 = vld [vmem:[#allocation6 + $0x20] sm:$0xff]   ;;  %v364_v14 = vld [vmem:[#allocation6 + $0x28] sm:$0xff]   ;;  %s417_s10 = scalar_lea.vmem %s285_s9, 256  ;;  %p422_p3 = scmp.lt.s32.totalorder %s285_s9, %s285_s9 }
  0x2c   :  { %321 = vmatprep.subr.bf16.mxu1 %v451_v0  ;;  %p418_p2 = scmp.ne.s32.totalorder %s285_s9, %s417_s10  ;;  %p423_p4 = scmp.lt.s32.totalorder %s417_s10, %s417_s10 }
  0x2e   :  { %330 = vmatpush3.bf16.msra.mxu0 %v360_v2  ;;  %p424_p5 = por %p423_p4, %p422_p3 }
  0x2f   :  { %335 = vmatprep.subr.bf16.mxu0 %v451_v0  ;;  %322 = vmatpush3.bf16.msra.mxu1 %v363_v6 }
  0x30   :  { %p425_p6 = pnand %p424_p5, %p418_p2 }
  0x31   :  { %v57_v8 = vld [vmem:[#allocation2] sm:$0xff]  ;;  %v58_v9 = vld [vmem:[#allocation2 + $0x10] sm:$0xff] }
  0x32   :  { %v66_v10 = vld [vmem:[#allocation2 + $0x1] sm:$0xff]  ;;  %v59_v11 = vpack.c.bf16 %v58_v9, %v57_v8  ;;  %v67_v12 = vld [vmem:[#allocation2 + $0x11] sm:$0xff] }
  0x33   :  { %v68_v13 = vpack.c.bf16 %v67_v12, %v66_v10  ;;  %v189_v15 = vld [vmem:[#allocation2 + $0x2] sm:$0xff]  ;;  %v190_v16 = vld [vmem:[#allocation2 + $0x12] sm:$0xff] }
  0x34   :  { %332 = vmatmul.mubr.msk.bf16.vlgmr.msra.gmra.mrb[0].mxu0 %vm45_vm0, %v59_v11  ;;  %v191_v17 = vpack.c.bf16 %v190_v16, %v189_v15 }
  0x35   :  { %336 = vmatpush3.bf16.msra.mxu0 %v361_v7  ;;  %324 = vmatmul.mubr.msk.bf16.vlgmr.msra.gmra.mrb[0].mxu1 %vm45_vm0, %v68_v13 }
  0x36   :  { %337 = vmatprep.subr.bf16.mxu0 %v451_v0  ;;  %339 = vmatprep.mubr.msk.bf16.mxu0 %vm452_vm2, %v451_v0 }
  0x39   :  { %338 = vmatpush3.bf16.msra.mxu0 %v364_v14 }
  0x40   :  { %340 = vmatmul.mubr.msk.bf16.vlgmr.msra.gmra.mrb[0].mxu0 %vm45_vm0, %v191_v17 }
 0x108   :  { %v124_v18 = vpop.f32.mrb[0].mxu1 }
 0x109   :  { %v325_v19 = vpop.f32.mrb[1].mxu1 }
 0x10a   :  { %v127_v20 = vpop.f32.mrb[2].mxu1 }
 0x10b   :  { %v326_v21 = vpop.f32.mrb[3].mxu1 }
 0x113   :  { %v246_v22 = vpop.f32.mrb[0].mxu0 }
 0x114   :  { %v343_v23 = vadd.f32 %v246_v22, %v124_v18  ;;  %v341_v24 = vpop.f32.mrb[1].mxu0 }
 0x115   :  { %v249_v25 = vpop.f32.mrb[2].mxu0 }
 0x116   :  { %v308_v26 = vmul.f32 -1.442695, %v343_v23  ;;  %v344_v27 = vadd.f32 %v249_v25, %v127_v20  ;;  %v342_v28 = vpop.f32.mrb[3].mxu0 }
 0x118   :  { %365 = vpow2.f32 %v308_v26  ;;  %v309_v29 = vmul.f32 -1.442695, %v344_v27 }
 0x11a   :  { %367 = vpow2.f32 %v309_v29 }
 0x122   :  { %v366_v30 = vpop.eup %365 }
 0x123   :  { %v261_v31 = vadd.f32 1.0, %v366_v30 }
 0x124   :  { %v368_v32 = vpop.eup %367 }
 0x125   :  { %369 = vrcp.f32 %v261_v31  ;;  %v262_v33 = vadd.f32 1.0, %v368_v32 }
 0x127   :  { %371 = vrcp.f32 %v262_v33 }
 0x12f   :  { %v370_v34 = vpop.eup %369 }
 0x130   :  { %269 = vrot.lane.b32.xlu0 %v370_v34, %s453_s1 }
 0x131   :  { %v372_v35 = vpop.eup %371 }
 0x134   :  { %271 = vrot.lane.b32.xlu0 %v372_v35, %s453_s1 }
 0x1a2   :  { %v270_v36 = vpop.permute.xlu0 %269 }
 0x1a3   :  { %v275_v37 = vmul.f32 %v343_v23, %v270_v36 }
 0x1a5   :  { %277 = vst.msk [vmem:[#allocation8] sm:$0xff] %vm45_vm0, %v275_v37 }
 0x1a6   :  { %v272_v38 = vpop.permute.xlu0 %271 }
 0x1a7   :  { %v276_v39 = vmul.f32 %v344_v27, %v272_v38 }
 0x1a9   :  { %278 = vst.msk [vmem:[#allocation8 + $0x8] sm:$0xff] %vm45_vm0, %v276_v39 }
 0x1aa   :  { %428 = shalt.err (!%p425_p6)
}
 0x1ab   :  { %s429_s13 = scalar_lea.hbm %s526_s2, 256 }
 0x1ac   :  { %p430_p7 = scmp.ne.s32.totalorder %s526_s2, %s429_s13  ;;  %p433_p8 = scmp.lt.u32.totalorder %s429_s13, %s526_s2 }
 0x1ae   :  { %p435_p9 = pnand %p433_p8, %p430_p7 }
 0x1b0   :  { %438 = shalt.err (!%p435_p9)
}
 0x1b1   :  { %290 = dma.vmem_to_hbm [thread:$0]  %s285_s9, 256, %s526_s2, [#allocation5], %s446_s19, %s446_s19, %s447_s20  }
 0x1b2   :  { %443 = dma.done.wait [#allocation5], 256  }
 0x1b3   :  { %444 = vsyncadd [#allocation5], 4294967040 }
 0x1b4   :  { %294 = vsyncpa [#allocation4], 1 }
 0x1b5   :  { %295 = vsyncpa [#allocation7], 1 }
 0x1b6   :  { %296 = vsyncpa [#allocation5], 1 }

</bundles_post_ra>
